<compile_context>
chip_gen: v6e
topology: v6e:2x2x1
jax: 0.10.0
libtpu: 0.0.40
codegen_flags: <defaults>
</compile_context>

<pallas_src>
import jax
import jax.numpy as jnp
from jax.experimental import pallas as pl
from jax.experimental.pallas import tpu as pltpu

_LANE = 128  # TPU lane width; last dim of a tiled block must be a multiple.


def _cdiv(a, b):
    return (a + b - 1) // b


def _round_up(n, m):
    return ((n + m - 1) // m) * m


def _choose_batch_tile(batch, block_batch, min_grid_steps):
    """Pick (tile_rows, padded_batch).

    - Single tile (block == full array): only 8-row alignment needed, so
      padding waste is < 8 rows.
    - Multi tile: tb must be a multiple of 128 (lane-dense transposed output);
      the split into >= min_grid_steps tiles (for v7x's two TensorCores) is
      only forced when the resulting padding waste stays small.
    """
    n_tiles = _cdiv(batch, block_batch)
    if n_tiles < min_grid_steps and batch >= min_grid_steps * _LANE:
        tb_split = _round_up(_cdiv(batch, min_grid_steps), _LANE)
        if min_grid_steps * tb_split - batch <= max(batch // 8, _LANE):
            n_tiles = min_grid_steps
    if n_tiles == 1:
        tb = _round_up(batch, 8)
    else:
        tb = _round_up(_cdiv(batch, n_tiles), _LANE)
    padded = _round_up(batch, tb)
    return tb, padded


def qnn_fused_kernel(x_ref, w1_ref, b1_ref, w2t_ref, b2_ref, p_ref,
                     c_ref, q_ref):
    """Fused Linear -> ReLU -> Linear (+ quantum surrogate) on one batch tile."""
    # Cast x to bf16 *inside* the kernel: HBM only carries the f32 input once.
    x_bf = x_ref[...].astype(jnp.bfloat16)
    # Linear(input_size, hidden_size): bf16 MXU inputs, f32 accumulation.
    h = jnp.dot(x_bf, w1_ref[...], preferred_element_type=jnp.float32)
    h = jnp.maximum(h + b1_ref[...], 0.0)              # bias + ReLU in f32 (VPU)
    # Linear(hidden_size, num_qubits) computed transposed so the store is
    # lane-dense: result is (num_qubits, tb), never a masked (tb, 8) store.
    c = jnp.einsum("qh,bh->qb", w2t_ref[...], h.astype(jnp.bfloat16),
                   preferred_element_type=jnp.float32)
    c_ref[...] = c + b2_ref[...]                       # b2 is (num_qubits, 1)
    # Quantum surrogate: per-qubit P(|1>) broadcast across the batch lanes.
    q_ref[...] = jnp.broadcast_to(p_ref[...], q_ref.shape)


def qnn_forward(x, w1, b1, w2, b2, theta, *, block_batch=4096,
                min_grid_steps=2, return_classical=False):
    """Mirrors QuantumNeuralNetwork.forward (quantum path is the analytic
    expectation of the reference circuit; see TODO above)."""
    batch, input_size = x.shape
    hidden_size = w1.shape[1]
    num_qubits = w2.shape[1]

    tb, padded_batch = _choose_batch_tile(batch, block_batch, min_grid_steps)
    if padded_batch != batch:
        # Padded zero rows produce ReLU(b1)@w2 + b2 garbage; they are sliced
        # off below and never reduced over.
        x = jnp.pad(x, ((0, padded_batch - batch), (0, 0)))

    # Weights / biases are tiny; cast / reshape them once in the wrapper.
    w1_bf = w1.astype(jnp.bfloat16)                          # (in, hidden)
    w2t_bf = w2.T.astype(jnp.bfloat16)                       # (num_qubits, hidden)
    b1_f = b1.reshape(1, hidden_size).astype(jnp.float32)
    b2_f = b2.reshape(num_qubits, 1).astype(jnp.float32)
    # P(measure |1>) after u3(theta, phi, lambda)|0> = (1 - cos theta) / 2.
    p = (0.5 * (1.0 - jnp.cos(theta.astype(jnp.float32)))).reshape(num_qubits, 1)

    grid = (padded_batch // tb,)

    c_t, q_t = pl.pallas_call(
        qnn_fused_kernel,
        out_shape=(
            jax.ShapeDtypeStruct((num_qubits, padded_batch), jnp.float32),
            jax.ShapeDtypeStruct((num_qubits, padded_batch), jnp.float32),
        ),
        grid_spec=pltpu.PrefetchScalarGridSpec(
            num_scalar_prefetch=0,
            grid=grid,
            in_specs=[
                pl.BlockSpec((tb, input_size), lambda i: (i, 0)),           # x tile (f32)
                pl.BlockSpec((input_size, hidden_size), lambda i: (0, 0)),  # w1 (VMEM resident)
                pl.BlockSpec((1, hidden_size), lambda i: (0, 0)),           # b1
                pl.BlockSpec((num_qubits, hidden_size), lambda i: (0, 0)),  # w2^T
                pl.BlockSpec((num_qubits, 1), lambda i: (0, 0)),            # b2 (column)
                pl.BlockSpec((num_qubits, 1), lambda i: (0, 0)),            # P(|1>) per qubit
            ],
            out_specs=[
                pl.BlockSpec((num_qubits, tb), lambda i: (0, i)),  # classical^T (lane-dense)
                pl.BlockSpec((num_qubits, tb), lambda i: (0, i)),  # quantum^T  (lane-dense)
            ],
        ),
        compiler_params=pltpu.CompilerParams(
            dimension_semantics=("parallel",)),
    )(x, w1_bf, b1_f, w2t_bf, b2_f, p)

    # Un-transpose the tiny (num_qubits, batch) results back to (batch, num_qubits).
    quantum_out = q_t[:, :batch].T
    if return_classical:
        classical_out = c_t[:, :batch].T
        return quantum_out, classical_out
    return quantum_out


def init_params(key, input_size, hidden_size, num_qubits):
    k1, k2, k3, k4, k5 = jax.random.split(key, 5)
    # PyTorch nn.Linear-style uniform(-1/sqrt(fan_in), 1/sqrt(fan_in)) init.
    lim1 = 1.0 / (input_size ** 0.5)
    lim2 = 1.0 / (hidden_size ** 0.5)
    w1 = jax.random.uniform(k1, (input_size, hidden_size), jnp.float32, -lim1, lim1)
    b1 = jax.random.uniform(k2, (hidden_size,), jnp.float32, -lim1, lim1)
    w2 = jax.random.uniform(k3, (hidden_size, num_qubits), jnp.float32, -lim2, lim2)
    b2 = jax.random.uniform(k4, (num_qubits,), jnp.float32, -lim2, lim2)
    # QuantumLayer.theta ~ randn(num_qubits); phi / lambda do not affect P(1).
    theta = jax.random.normal(k5, (num_qubits,), jnp.float32)
    return w1, b1, w2, b2, theta


def _reference(x, w1, b1, w2, b2, theta):
    """Pure-JAX reference with the same bf16-input / f32-accumulate recipe."""
    x_bf, w1_bf, w2_bf = (a.astype(jnp.bfloat16) for a in (x, w1, w2))
    h = jnp.maximum(
        jnp.dot(x_bf, w1_bf, preferred_element_type=jnp.float32) + b1, 0.0)
    c = jnp.dot(h.astype(jnp.bfloat16), w2_bf,
                preferred_element_type=jnp.float32) + b2
    q = jnp.broadcast_to(
        (0.5 * (1.0 - jnp.cos(theta))).reshape(1, -1), c.shape)
    return q, c


if __name__ == "__main__":
    input_size, hidden_size, num_qubits = 32, 32, 8

    key = jax.random.PRNGKey(0)
    kx, kp, kx2 = jax.random.split(key, 3)
    w1, b1, w2, b2, theta = init_params(kp, input_size, hidden_size, num_qubits)

    # --- small demo batch (single tile, no padding) ---
    batch = 8
    x = jax.random.normal(kx, (batch, input_size), jnp.float32)
    quantum_out, classical_out = qnn_forward(
        x, w1, b1, w2, b2, theta, return_classical=True)
    jax.block_until_ready(quantum_out)
    jax.block_until_ready(classical_out)

    assert quantum_out.shape == (batch, num_qubits)
    assert classical_out.shape == (batch, num_qubits)
    assert quantum_out.dtype == jnp.float32
    assert classical_out.dtype == jnp.float32

    q_ref, c_ref = _reference(x, w1, b1, w2, b2, theta)
    assert jnp.allclose(classical_out, c_ref, atol=1e-2, rtol=1e-2), (
        float(jnp.max(jnp.abs(classical_out - c_ref))))
    assert jnp.allclose(quantum_out, q_ref, atol=1e-6, rtol=1e-6)

    # --- larger batch exercising the multi-tile, padded, lane-dense path ---
    batch2 = 400
    x2 = jax.random.normal(kx2, (batch2, input_size), jnp.float32)
    quantum_out2, classical_out2 = qnn_forward(
        x2, w1, b1, w2, b2, theta, return_classical=True)
    jax.block_until_ready(classical_out2)

    q_ref2, c_ref2 = _reference(x2, w1, b1, w2, b2, theta)
    assert classical_out2.shape == (batch2, num_qubits)
    assert jnp.allclose(classical_out2, c_ref2, atol=1e-2, rtol=1e-2), (
        float(jnp.max(jnp.abs(classical_out2 - c_ref2))))
    assert jnp.allclose(quantum_out2, q_ref2, atol=1e-6, rtol=1e-6)

    print("KERNEL_OK")
</pallas_src>

<mosaic_0001>
module attributes {stable_mosaic.version = 11 : i64} {
  func.func @qnn_fused_kernel(%arg0: i32, %arg1: memref<8x32xf32, #tpu.memory_space<vmem>>, %arg2: memref<32x32xbf16, #tpu.memory_space<vmem>>, %arg3: memref<1x32xf32, #tpu.memory_space<vmem>>, %arg4: memref<8x32xbf16, #tpu.memory_space<vmem>>, %arg5: memref<8x1xf32, #tpu.memory_space<vmem>>, %arg6: memref<8x1xf32, #tpu.memory_space<vmem>>, %arg7: memref<8x8xf32, #tpu.memory_space<vmem>>, %arg8: memref<8x8xf32, #tpu.memory_space<vmem>>) attributes {dimension_semantics = [#tpu.dimension_semantics<parallel>], iteration_bounds = array<i64: 1>, scalar_prefetch = 0 : i64, scratch_operands = 0 : i64, tpu.core_type = #tpu.core_type<tc>, window_params = [{transform_indices = @transform_0, window_bounds = array<i64: 8, 32>}, {pipeline_mode = #tpu.pipeline_mode<synchronous>, transform_indices = @transform_1, window_bounds = array<i64: 32, 32>}, {pipeline_mode = #tpu.pipeline_mode<synchronous>, transform_indices = @transform_2, window_bounds = array<i64: 1, 32>}, {pipeline_mode = #tpu.pipeline_mode<synchronous>, transform_indices = @transform_3, window_bounds = array<i64: 8, 32>}, {pipeline_mode = #tpu.pipeline_mode<synchronous>, transform_indices = @transform_4, window_bounds = array<i64: 8, 1>}, {pipeline_mode = #tpu.pipeline_mode<synchronous>, transform_indices = @transform_5, window_bounds = array<i64: 8, 1>}, {transform_indices = @transform_6, window_bounds = array<i64: 8, 8>}, {transform_indices = @transform_7, window_bounds = array<i64: 8, 8>}]} {
    %c0 = arith.constant 0 : index
    %c0_0 = arith.constant 0 : index
    %0 = vector.load %arg1[%c0, %c0_0] : memref<8x32xf32, #tpu.memory_space<vmem>>, vector<8x32xf32>
    %1 = arith.truncf %0 : vector<8x32xf32> to vector<8x32xbf16>
    %c0_1 = arith.constant 0 : index
    %c0_2 = arith.constant 0 : index
    %2 = vector.load %arg2[%c0_1, %c0_2] : memref<32x32xbf16, #tpu.memory_space<vmem>>, vector<32x32xbf16>
    %cst = arith.constant dense<0.000000e+00> : vector<8x32xf32>
    %3 = tpu.matmul %1, %2, %cst {dimension_numbers = #tpu.dot_dimension_numbers<[1], [0], [0], [1], [0, 0, 1, 1], [], []>} : vector<8x32xbf16>, vector<32x32xbf16>, vector<8x32xf32> -> vector<8x32xf32>
    %c0_3 = arith.constant 0 : index
    %c0_4 = arith.constant 0 : index
    %4 = vector.load %arg3[%c0_3, %c0_4] : memref<1x32xf32, #tpu.memory_space<vmem>>, vector<1x32xf32>
    %5 = vector.broadcast %4 : vector<1x32xf32> to vector<8x32xf32>
    %6 = arith.addf %3, %5 : vector<8x32xf32>
    %cst_5 = arith.constant 0.000000e+00 : f32
    %7 = vector.broadcast %cst_5 : f32 to vector<8x32xf32>
    %8 = arith.maximumf %6, %7 : vector<8x32xf32>
    %c0_6 = arith.constant 0 : index
    %c0_7 = arith.constant 0 : index
    %9 = vector.load %arg4[%c0_6, %c0_7] : memref<8x32xbf16, #tpu.memory_space<vmem>>, vector<8x32xbf16>
    %10 = arith.truncf %8 : vector<8x32xf32> to vector<8x32xbf16>
    "tpu.trace_start"() <{level = 10 : i32, message = "qh,bh->qb"}> : () -> ()
    %cst_8 = arith.constant dense<0.000000e+00> : vector<8x8xf32>
    %11 = tpu.matmul %9, %10, %cst_8 {dimension_numbers = #tpu.dot_dimension_numbers<[1], [1], [0], [0], [0, 0, 1, 0], [], []>} : vector<8x32xbf16>, vector<8x32xbf16>, vector<8x8xf32> -> vector<8x8xf32>
    "tpu.trace_stop"() : () -> ()
    %c0_9 = arith.constant 0 : index
    %c0_10 = arith.constant 0 : index
    %12 = vector.load %arg5[%c0_9, %c0_10] : memref<8x1xf32, #tpu.memory_space<vmem>>, vector<8x1xf32>
    %13 = vector.broadcast %12 : vector<8x1xf32> to vector<8x8xf32>
    %14 = arith.addf %11, %13 : vector<8x8xf32>
    %c0_11 = arith.constant 0 : index
    %c0_12 = arith.constant 0 : index
    %15 = vector.load %arg7[%c0_11, %c0_12] : memref<8x8xf32, #tpu.memory_space<vmem>>, vector<8x8xf32>
    tpu.vector_store %arg7[%c0_11, %c0_12], %14 {strides = array<i32>} : memref<8x8xf32, #tpu.memory_space<vmem>>, vector<8x8xf32>,
    %c0_13 = arith.constant 0 : index
    %c0_14 = arith.constant 0 : index
    %16 = vector.load %arg6[%c0_13, %c0_14] : memref<8x1xf32, #tpu.memory_space<vmem>>, vector<8x1xf32>
    %17 = vector.shape_cast %16 : vector<8x1xf32> to vector<8x1xf32>
    %18 = vector.broadcast %17 : vector<8x1xf32> to vector<8x8xf32>
    %c0_15 = arith.constant 0 : index
    %c0_16 = arith.constant 0 : index
    %19 = vector.load %arg8[%c0_15, %c0_16] : memref<8x8xf32, #tpu.memory_space<vmem>>, vector<8x8xf32>
    tpu.vector_store %arg8[%c0_15, %c0_16], %18 {strides = array<i32>} : memref<8x8xf32, #tpu.memory_space<vmem>>, vector<8x8xf32>,
    return
  }
  func.func @transform_0(%arg0: i32) -> (i32, i32) {
    %c0_i32 = arith.constant 0 : i32
    %c0_i32_0 = arith.constant 0 : i32
    return %arg0, %c0_i32 : i32, i32
  }
  func.func @transform_1(%arg0: i32) -> (i32, i32) {
    %c0_i32 = arith.constant 0 : i32
    %c0_i32_0 = arith.constant 0 : i32
    %c0_i32_1 = arith.constant 0 : i32
    return %c0_i32, %c0_i32_0 : i32, i32
  }
  func.func @transform_2(%arg0: i32) -> (i32, i32) {
    %c0_i32 = arith.constant 0 : i32
    %c0_i32_0 = arith.constant 0 : i32
    %c0_i32_1 = arith.constant 0 : i32
    return %c0_i32, %c0_i32_0 : i32, i32
  }
  func.func @transform_3(%arg0: i32) -> (i32, i32) {
    %c0_i32 = arith.constant 0 : i32
    %c0_i32_0 = arith.constant 0 : i32
    %c0_i32_1 = arith.constant 0 : i32
    return %c0_i32, %c0_i32_0 : i32, i32
  }
  func.func @transform_4(%arg0: i32) -> (i32, i32) {
    %c0_i32 = arith.constant 0 : i32
    %c0_i32_0 = arith.constant 0 : i32
    %c0_i32_1 = arith.constant 0 : i32
    return %c0_i32, %c0_i32_0 : i32, i32
  }
  func.func @transform_5(%arg0: i32) -> (i32, i32) {
    %c0_i32 = arith.constant 0 : i32
    %c0_i32_0 = arith.constant 0 : i32
    %c0_i32_1 = arith.constant 0 : i32
    return %c0_i32, %c0_i32_0 : i32, i32
  }
  func.func @transform_6(%arg0: i32) -> (i32, i32) {
    %c0_i32 = arith.constant 0 : i32
    %c0_i32_0 = arith.constant 0 : i32
    return %c0_i32, %arg0 : i32, i32
  }
  func.func @transform_7(%arg0: i32) -> (i32, i32) {
    %c0_i32 = arith.constant 0 : i32
    %c0_i32_0 = arith.constant 0 : i32
    return %c0_i32, %arg0 : i32, i32
  }
}

</mosaic_0001>

<bundles_post_ra>
// kernel: tpu_custom_call.1
= control target key start
LH: loop header
LB: loop body
LE: loop exit
PB: predicated region body
PF: predicated region fallthrough
CT: control target
= control target key end

     0   :  { %13 = vsyncpa [#allocation3], 0  ;;  %s416_s0 = inlined_call_operand.hbm [shape: f32[8,32], index: 0, kind: input, shape index: {}]   ;;  %s417_s1 = inlined_call_operand.vmem [shape: bf16[32,32], index: 1, kind: input, shape index: {}]   ;;  %s418_s2 = inlined_call_operand.hbm [shape: f32[1,32], index: 2, kind: input, shape index: {}]   ;;  %s419_s3 = inlined_call_operand.vmem [shape: bf16[8,32], index: 3, kind: input, shape index: {}]   ;;  %s420_s4 = inlined_call_operand.vmem [shape: f32[8,1], index: 4, kind: input, shape index: {}]   ;;  %s421_s5 = inlined_call_operand.vmem [shape: f32[8,1], index: 5, kind: input, shape index: {}]   ;;  %s422_s6 = inlined_call_operand.hbm [shape: f32[8,8], index: 6, kind: output, shape index: {0}]   ;;  %s423_s7 = inlined_call_operand.hbm [shape: f32[8,8], index: 7, kind: output, shape index: {1}]  }
   0x1   :  { %14 = vsyncpa [#allocation6], 0 }
   0x2   :  { %15 = vsyncpa [#allocation4], 0 }
   0x3   :  { %16 = vsyncpa [#allocation9], 0  ;;  %s337_s24 = smov [#allocation2]   ;;  %s338_s26 = smov [#allocation5]  }
   0x4   :  { %s23_s25 = sshll.u32 %s337_s24, 4  ;;  %s35_s27 = sshll.u32 %s338_s26, 4  ;;  %s24_s25 = int_to_ptr.vmem [resolvable:$true] %s23_s25  ;;  %s36_s27 = int_to_ptr.vmem [resolvable:$true] %s35_s27 }
   0x5   :  { %s257_s28 = scalar_lea.vmem %s24_s25, 128  ;;  %p262_p1 = scmp.lt.s32.totalorder %s24_s25, %s24_s25 }
   0x6   :  { %p258_p0 = scmp.ne.s32.totalorder %s24_s25, %s257_s28  ;;  %p263_p2 = scmp.lt.s32.totalorder %s257_s28, %s257_s28 }
   0x8   :  { %p264_p3 = por %p263_p2, %p262_p1 }
   0xa   :  { %p265_p4 = pnand %p264_p3, %p258_p0 }
   0xc   :  { %268 = shalt.err (!%p265_p4)
}
   0xd   :  { %26 = dma.hbm_to_vmem [thread:$0]  %s416_s0, 128, %s24_s25, [#allocation3]  }
   0xe   :  { %s277_s8 = scalar_lea.vmem %s36_s27, 16  ;;  %s281_s9 = scalar_lea.vmem %s36_s27, 32 }
   0xf   :  { %p278_p5 = scmp.ne.s32.totalorder %s36_s27, %s277_s8  ;;  %p282_p6 = scmp.lt.s32.totalorder %s36_s27, %s36_s27 }
  0x10   :  { %p283_p7 = scmp.lt.s32.totalorder %s281_s9, %s277_s8 }
  0x12   :  { %p284_p8 = por %p283_p7, %p282_p6 }
  0x14   :  { %p285_p9 = pnand %p284_p8, %p278_p5 }
  0x16   :  { %288 = shalt.err (!%p285_p9)
}
  0x17   :  { %38 = dma.hbm_to_vmem [thread:$0]  %s418_s2, 16, %s36_s27, [#allocation6]  }
  0x18   :  { %329 = dma.done.wait [#allocation3], 128  }
  0x19   :  { %330 = vsyncadd [#allocation3], 4294967168 }
  0x1a   :  { %331 = dma.done.wait [#allocation6], 16  }
  0x1b   :  { %332 = vsyncadd [#allocation6], 4294967280  ;;  %v339_v0 = vmov 0.0   ;;  %vm340_vm0 = vmmov 0   ;;  %v247_v1 = vld [vmem:[%s417_s1 + $0x8] sm:$0xff]   ;;  %v248_v2 = vld [vmem:[%s417_s1] sm:$0xff]  }
  0x1c   :  { %225 = vmatprep.subr.bf16.mxu0 %v339_v0  ;;  %229 = vmatprep.mubr.msk.bf16.mxu0 %vm340_vm0, %v339_v0  ;;  %v52_v3 = vld [vmem:[#allocation2] sm:$0xff]  ;;  %vm77_vm1 = vcmask 261120   ;;  %v341_v6 = vmov 0   ;;  %v215_v8 = vld [vmem:[#allocation5] ss:$0 sm:$0xff]  ;;  %vm176_vm2 = vcmask 64512  }
  0x1d   :  { %233 = vmatprep.subr.bf16.mxu1 %v339_v0  ;;  %235 = vmatprep.mubr.msk.bf16.mxu1 %vm340_vm0, %v339_v0  ;;  %v53_v4 = vpack.c.bf16 %v52_v3, %v52_v3  ;;  %v124_v5 = vld [vmem:[%s420_s4] sm:$0xff] }
  0x1e   :  { %226 = vmatpush3.bf16.msra.mxu0 %v247_v1  ;;  %246 = vset.pattern.permute.xlu0 %v341_v6  ;;  %v178_v7 = vld [vmem:[%s421_s5] sm:$0xff]  ;;  %s342_s5 = smov [#allocation8]  }
  0x1f   :  { %227 = vmatprep.subr.bf16.mxu0 %v339_v0  ;;  %127 = vperm.xlu0 %246, %v124_v5   ;;  %v122_v17 = vld [vmem:[%s419_s3] sm:$0xf]  ;;  %s201_s18 = sshll.u32 %s342_s5, 4  ;;  %s202_s18 = int_to_ptr.vmem [resolvable:$true] %s201_s18 }
  0x20   :  { %s289_s19 = scalar_lea.vmem %s202_s18, 128  ;;  %p294_p11 = scmp.lt.s32.totalorder %s202_s18, %s202_s18 }
  0x21   :  { %p290_p10 = scmp.ne.s32.totalorder %s202_s18, %s289_s19  ;;  %p295_p12 = scmp.lt.s32.totalorder %s289_s19, %s289_s19 }
  0x22   :  { %228 = vmatpush3.bf16.msra.mxu0 %v248_v2 }
  0x23   :  { %181 = vperm.xlu0 %246, %v178_v7   ;;  %p296_p13 = por %p295_p12, %p294_p11 }
  0x25   :  { %230 = vmatmul.mubr.msk.bf16.vlgmr.msra.gmra.mxu0 %vm77_vm1, %v53_v4  ;;  %p297_p0 = pnand %p296_p13, %p290_p10 }
  0x9a   :  { %v128_v18 = vpop.permute.xlu0 %127 }
  0x9e   :  { %v182_v19 = vpop.permute.xlu0 %181 }
  0x9f   :  { %184 = vst.msk [vmem:[#allocation8] sm:$0xff] %vm176_vm2, %v182_v19 }
  0xe5   :  { %v115_v9 = vpop.f32.mrf.mxu0 }
  0xe6   :  { %v116_v10 = vadd.f32 %v215_v8, %v115_v9 }
  0xe7   :  { %v231_v11 = vpop.f32.mrf.mxu0 }
  0xe8   :  { %v121_v12 = vmax.f32 %v116_v10, 0.0 }
  0xe9   :  { %v118_v13 = vpop.f32.mrf.mxu0 }
  0xea   :  { %v123_v14 = vpack.c.bf16 %v121_v12, %v121_v12 }
  0xeb   :  { %v232_v15 = vpop.f32.mrf.mxu0 }
  0xec   :  { %v134_v16 = vsel %vm77_vm1, %v123_v14, 0 }
  0xed   :  { %234 = vmatpush3.bf16.xpose.msra.mxu1 %v134_v16 }
  0xf4   :  { %236 = vmatmul.mubr.msk.bf16.vlgmr.msra.gmra.mxu1 %vm77_vm1, %v122_v17 }
  0xf5   :  { %300 = shalt.err (!%p297_p0)
}
  0xf6   :  { %204 = dma.vmem_to_hbm [thread:$0]  %s202_s18, 128, %s423_s7, [#allocation9]  }
  0xf7   :  { %s343_s3 = smov [#allocation7]  }
  0xf8   :  { %s191_s22 = sshll.u32 %s343_s3, 4  ;;  %s192_s22 = int_to_ptr.vmem [resolvable:$true] %s191_s22 }
  0xf9   :  { %s309_s23 = scalar_lea.vmem %s192_s22, 128  ;;  %p314_p2 = scmp.lt.s32.totalorder %s192_s22, %s192_s22 }
  0xfa   :  { %p310_p1 = scmp.ne.s32.totalorder %s192_s22, %s309_s23  ;;  %p315_p3 = scmp.lt.s32.totalorder %s309_s23, %s309_s23 }
  0xfc   :  { %p316_p4 = por %p315_p3, %p314_p2 }
  0xfe   :  { %p317_p5 = pnand %p316_p4, %p310_p1 }
 0x1b4   :  { %v170_v20 = vpop.f32.mrf.mxu1 }
 0x1b5   :  { %v171_v21 = vadd.f32 %v170_v20, %v128_v18 }
 0x1b6   :  { %v237_v22 = vpop.f32.mrf.mxu1 }
 0x1b7   :  { %177 = vst.msk [vmem:[#allocation7] sm:$0xff] %vm176_vm2, %v171_v21 }
 0x1b8   :  { %v173_v23 = vpop.f32.mrf.mxu1 }
 0x1b9   :  { %320 = shalt.err (!%p317_p5)
}
 0x1ba   :  { %194 = dma.vmem_to_hbm [thread:$0]  %s192_s22, 128, %s422_s6, [#allocation4]   ;;  %v238_v24 = vpop.f32.mrf.mxu1 }
 0x1bb   :  { %333 = dma.done.wait [#allocation4], 128  }
 0x1bc   :  { %334 = vsyncadd [#allocation4], 4294967168 }
 0x1bd   :  { %335 = dma.done.wait [#allocation9], 128  }
 0x1be   :  { %336 = vsyncadd [#allocation9], 4294967168 }
 0x1bf   :  { %211 = vsyncpa [#allocation3], 1 }
 0x1c0   :  { %212 = vsyncpa [#allocation6], 1 }
 0x1c1   :  { %213 = vsyncpa [#allocation4], 1 }
 0x1c2   :  { %214 = vsyncpa [#allocation9], 1 }

</bundles_post_ra>
